<compile_context>
chip_gen: v6e
topology: v6e:2x2x1
jax: 0.10.0
libtpu: 0.0.40
codegen_flags: <defaults>
</compile_context>

<pallas_src>
import functools

import jax
import jax.numpy as jnp
import numpy as np
from jax.experimental import pallas as pl
from jax.experimental.pallas import tpu as pltpu

IGNORE_INDEX = 0

_LANE = 128
_SUBLANE = 8
_TC_MAX = 4096                       # class tile for huge vocabularies (multiple of 128)
_LOGITS_BUF_TARGET = 8 * 1024 * 1024  # per logits DMA buffer (~85%+ of HBM roofline)


def _round_up(x, m):
    return ((x + m - 1) // m) * m


def _default_vmem_limit():
    """~48 MiB on v7x (64 MiB physical VMEM), ~96 MiB on v5e/v6e (128 MiB physical)."""
    try:
        cap = int(pltpu.get_tpu_info().vmem_capacity_bytes)
    except Exception:
        cap = 64 * 1024 * 1024        # conservative (v7x-sized) fallback
    return int(min(96 * 1024 * 1024, (cap * 3) // 4))


def _auto_tiles(n_rows, n_classes, in_itemsize, vmem_limit):
    """Pick (tm, tc): byte-based, intermediate-aware, generation-aware."""
    tc = n_classes if n_classes <= _TC_MAX else _TC_MAX
    tc_pad = _round_up(tc, _LANE)     # VMEM lane padding of the class axis

    # Bytes per tile row:
    #   2 x double-buffered logits tile rows (native dtype, lane-padded)
    # + ~16 B/elem of f32/i32 (tm, tc) in-kernel intermediates (col iota, shifted, exp,
    #   select results)
    # + 3 f32 (tm,1) online-LSE scratch columns + double-buffered (tm,1) i32 targets,
    #   each lane-padded to 128 in VMEM.
    per_row = tc_pad * (2 * in_itemsize + 16) + 5 * _LANE * 4

    budget = int(vmem_limit * 0.85)
    tm = budget // per_row
    tm = min(tm, _LOGITS_BUF_TARGET // max(1, tc_pad * in_itemsize))
    tm = max(_SUBLANE, (tm // _SUBLANE) * _SUBLANE)
    tm = min(tm, max(_SUBLANE, _round_up(n_rows, _SUBLANE)))

    # v7x has 2 TensorCores: make sure the "parallel" row axis has >= 2 blocks so both
    # engage (measured ~neutral on single-TC v5e/v6e).
    if n_rows >= 2 * _SUBLANE and (n_rows + tm - 1) // tm < 2:
        tm = max(_SUBLANE, _round_up((n_rows + 1) // 2, _SUBLANE))

    return int(tm), int(tc)


def _ce_kernel(logits_ref, tgt_ref, out_ref, m_sc, l_sc, t_sc, *,
               ignore_index, n_rows, n_classes):
    i = pl.program_id(0)          # row-block index ("parallel")
    j = pl.program_id(1)          # class-block index ("arbitrary", reduction)
    tm, tc = logits_ref.shape

    @pl.when(j == 0)
    def _init():
        m_sc[...] = jnp.full_like(m_sc, -jnp.inf)   # running max
        l_sc[...] = jnp.zeros_like(l_sc)            # running sum(exp(x - m))
        t_sc[...] = jnp.zeros_like(t_sc)            # target-class logit (f32)

    logits = logits_ref[...]                        # (tm, tc), kept in native dtype
    tgt = tgt_ref[...]                              # (tm, 1) int32

    col = jax.lax.broadcasted_iota(jnp.int32, (tm, tc), 1) + j * tc

    if n_classes % tc != 0:
        # Ragged last class block: out-of-range lanes hold undefined data; push them to
        # the dtype minimum so they neither win the max nor contribute to sum(exp).
        neg_fill = jnp.asarray(jnp.finfo(logits.dtype).min, dtype=logits.dtype)
        logits = jnp.where(col < n_classes, logits, neg_fill)

    # Target-class logit via one-hot compare (no dynamic gather on TPU).  At most one
    # nonzero per row, so the native-dtype sum is exact; accumulate in f32.
    t_sc[...] += jnp.sum(jnp.where(col == tgt, logits, jnp.zeros_like(logits)),
                         axis=-1, keepdims=True).astype(jnp.float32)

    # Online (flash-style) logsumexp across class blocks.  Max + subtract stay in the
    # input's native dtype (bf16 packed on the VALU for v6e/v7x); upcast right before exp.
    m_prev = m_sc[...]
    m_new = jnp.maximum(
        m_prev, jnp.max(logits, axis=-1, keepdims=True).astype(jnp.float32))
    shifted = (logits - m_new.astype(logits.dtype)).astype(jnp.float32)
    l_sc[...] = jnp.exp(m_prev - m_new) * l_sc[...] + \
        jnp.sum(jnp.exp(shifted), axis=-1, keepdims=True)
    m_sc[...] = m_new

    @pl.when(j == pl.num_programs(1) - 1)
    def _finalize():
        # Ragged-row mask (rows past N in the padded last block) + ignore_index mask.
        row = jax.lax.broadcasted_iota(jnp.int32, (tm, 1), 0) + i * tm
        valid = jnp.logical_and(row < n_rows, tgt != ignore_index)
        lse = m_sc[...] + jnp.log(l_sc[...])
        # select (not multiply) so NaN/Inf from undefined padded rows cannot leak.
        loss = jnp.where(valid, lse - t_sc[...], 0.0)
        vcnt = jnp.where(valid, 1.0, 0.0)
        # One lane-dense (1, 8, 128) partial block per row tile:
        #   sublane 0 = loss sum, sublane 1 = valid count.
        s = jax.lax.broadcasted_iota(jnp.int32, out_ref.shape, 1)
        out_ref[...] = jnp.where(s == 0, jnp.sum(loss),
                                 jnp.where(s == 1, jnp.sum(vcnt), 0.0))


def cross_entropy_loss(preds, target, *, ignore_index=IGNORE_INDEX, tm=None, tc=None,
                       vmem_limit_bytes=None):
    """preds: (..., C) float; target: (...) int.  Returns scalar f32 mean CE loss over
    rows whose target != ignore_index (PyTorch nn.CrossEntropyLoss semantics).
    NOTE: if every target is ignored the result is nan (matches PyTorch)."""
    C = preds.shape[-1]
    logits = preds.reshape(-1, C)                    # keep input dtype; kernel upcasts late
    tgt2d = target.reshape(-1, 1).astype(jnp.int32)
    N = logits.shape[0]

    if vmem_limit_bytes is None:
        vmem_limit_bytes = _default_vmem_limit()

    auto_tm, auto_tc = _auto_tiles(N, C, logits.dtype.itemsize, vmem_limit_bytes)
    if tc is None:
        tc = auto_tc
    else:
        tc = int(tc)
        tc = C if tc >= C else max(_LANE, (tc // _LANE) * _LANE)
    if tm is None:
        tm = auto_tm
    else:
        tm = max(_SUBLANE, (int(tm) // _SUBLANE) * _SUBLANE)
        tm = min(tm, max(_SUBLANE, _round_up(N, _SUBLANE)))

    grid_rows = pl.cdiv(N, tm)
    grid_cls = pl.cdiv(C, tc)

    kernel = functools.partial(_ce_kernel, ignore_index=ignore_index,
                               n_rows=N, n_classes=C)

    partials = pl.pallas_call(
        kernel,
        out_shape=jax.ShapeDtypeStruct((grid_rows, 8, 128), jnp.float32),
        grid_spec=pltpu.PrefetchScalarGridSpec(
            num_scalar_prefetch=0,
            grid=(grid_rows, grid_cls),
            in_specs=[
                pl.BlockSpec((tm, tc), lambda i, j: (i, j)),
                # targets are tiny vs. logits; same (tm,1) block re-used across the
                # class axis (no re-DMA while the block index is unchanged).
                pl.BlockSpec((tm, 1), lambda i, j: (i, 0)),
            ],
            out_specs=pl.BlockSpec((1, 8, 128), lambda i, j: (i, 0, 0)),
            scratch_shapes=[
                pltpu.VMEM((tm, 1), jnp.float32),   # running max
                pltpu.VMEM((tm, 1), jnp.float32),   # running sum(exp)
                pltpu.VMEM((tm, 1), jnp.float32),   # target-class logit
            ],
        ),
        compiler_params=pltpu.CompilerParams(
            dimension_semantics=("parallel", "arbitrary"),
            vmem_limit_bytes=int(vmem_limit_bytes),
        ),
    )(logits, tgt2d)

    total = jnp.sum(partials[:, 0, 0])
    count = jnp.sum(partials[:, 1, 0])
    return total / count


def _reference(preds, target, ignore_index=IGNORE_INDEX):
    C = preds.shape[-1]
    logits = preds.reshape(-1, C).astype(jnp.float32)
    tgt = target.reshape(-1).astype(jnp.int32)
    lse = jax.nn.logsumexp(logits, axis=-1)
    tgt_logit = jnp.take_along_axis(logits, tgt[:, None], axis=-1)[:, 0]
    loss = lse - tgt_logit
    mask = (tgt != ignore_index).astype(jnp.float32)
    return jnp.sum(loss * mask) / jnp.sum(mask)


if __name__ == "__main__":
    key = jax.random.PRNGKey(0)

    # Case 1: small shapes implied by the forward: preds (batch, seq, C), target (batch, seq)
    k1, k2 = jax.random.split(key)
    batch, seq, num_classes = 2, 8, 32
    preds = jax.random.normal(k1, (batch, seq, num_classes), dtype=jnp.float32)
    target = jax.random.randint(k2, (batch, seq), 0, num_classes, dtype=jnp.int32)
    loss = cross_entropy_loss(preds, target)
    jax.block_until_ready(loss)
    np.testing.assert_allclose(np.asarray(loss), np.asarray(_reference(preds, target)),
                               rtol=2e-5, atol=2e-5)

    # Case 2: N not a multiple of 8 -> in-kernel ragged-row mask (+ auto 2-block row grid).
    k3, k4 = jax.random.split(k1)
    preds2 = jax.random.normal(k3, (3, 7, num_classes), dtype=jnp.float32)
    target2 = jax.random.randint(k4, (3, 7), 0, num_classes, dtype=jnp.int32)
    loss2 = cross_entropy_loss(preds2, target2)
    jax.block_until_ready(loss2)
    np.testing.assert_allclose(np.asarray(loss2), np.asarray(_reference(preds2, target2)),
                               rtol=2e-5, atol=2e-5)

    # Case 3: forced tm=8 -> long "parallel" grid of lane-dense partial blocks.
    k5, k6 = jax.random.split(k3)
    preds3 = jax.random.normal(k5, (2, 32, num_classes), dtype=jnp.float32)
    target3 = jax.random.randint(k6, (2, 32), 0, num_classes, dtype=jnp.int32)
    loss3 = cross_entropy_loss(preds3, target3, tm=8)
    jax.block_until_ready(loss3)
    np.testing.assert_allclose(np.asarray(loss3), np.asarray(_reference(preds3, target3)),
                               rtol=2e-5, atol=2e-5)

    # Case 4: class-tiled online-logsumexp path with a ragged last class block (C=200, tc=128).
    k7, k8 = jax.random.split(k5)
    preds4 = jax.random.normal(k7, (2, 8, 200), dtype=jnp.float32)
    target4 = jax.random.randint(k8, (2, 8), 0, 200, dtype=jnp.int32)
    loss4 = cross_entropy_loss(preds4, target4, tm=8, tc=128)
    jax.block_until_ready(loss4)
    np.testing.assert_allclose(np.asarray(loss4), np.asarray(_reference(preds4, target4)),
                               rtol=2e-5, atol=2e-5)

    # Case 5: bf16 inputs (native-dtype max/subtract/select path); looser tolerance.
    k9, k10 = jax.random.split(k7)
    preds5 = jax.random.normal(k9, (2, 16, 64), dtype=jnp.float32).astype(jnp.bfloat16)
    target5 = jax.random.randint(k10, (2, 16), 0, 64, dtype=jnp.int32)
    loss5 = cross_entropy_loss(preds5, target5)
    jax.block_until_ready(loss5)
    np.testing.assert_allclose(np.asarray(loss5), np.asarray(_reference(preds5, target5)),
                               rtol=5e-2, atol=5e-2)

    print("KERNEL_OK")
</pallas_src>

<mosaic_0001>
module attributes {stable_mosaic.version = 11 : i64} {
  func.func @_ce_kernel(%arg0: i32, %arg1: i32, %arg2: memref<8x32xf32, #tpu.memory_space<vmem>>, %arg3: memref<8x1xi32, #tpu.memory_space<vmem>>, %arg4: memref<1x8x128xf32, #tpu.memory_space<vmem>>, %arg5: memref<8x1xf32, #tpu.memory_space<vmem>>, %arg6: memref<8x1xf32, #tpu.memory_space<vmem>>, %arg7: memref<8x1xf32, #tpu.memory_space<vmem>>) attributes {dimension_semantics = [#tpu.dimension_semantics<parallel>, #tpu.dimension_semantics<arbitrary>], iteration_bounds = array<i64: 2, 1>, scalar_prefetch = 0 : i64, scratch_operands = 3 : i64, tpu.core_type = #tpu.core_type<tc>, window_params = [{transform_indices = @transform_0, window_bounds = array<i64: 8, 32>}, {transform_indices = @transform_1, window_bounds = array<i64: 8, 1>}, {transform_indices = @transform_2, window_bounds = array<i64: 1, 8, 128>}]} {
    %c0_i32 = arith.constant 0 : i32
    %0 = arith.cmpi eq, %arg1, %c0_i32 : i32
    %1 = arith.extui %0 : i1 to i32
    %c0_i32_0 = arith.constant 0 : i32
    %2 = arith.cmpi ne, %1, %c0_i32_0 : i32
    scf.if %2 {
      %cst_21 = arith.constant 0xFF800000 : f32
      %37 = vector.broadcast %cst_21 : f32 to vector<8x1xf32>
      %c0_22 = arith.constant 0 : index
      %c0_23 = arith.constant 0 : index
      %38 = vector.load %arg5[%c0_22, %c0_23] : memref<8x1xf32, #tpu.memory_space<vmem>>, vector<8x1xf32>
      tpu.vector_store %arg5[%c0_22, %c0_23], %37 {strides = array<i32>} : memref<8x1xf32, #tpu.memory_space<vmem>>, vector<8x1xf32>,
      %cst_24 = arith.constant 0.000000e+00 : f32
      %39 = vector.broadcast %cst_24 : f32 to vector<8x1xf32>
      %c0_25 = arith.constant 0 : index
      %c0_26 = arith.constant 0 : index
      %40 = vector.load %arg6[%c0_25, %c0_26] : memref<8x1xf32, #tpu.memory_space<vmem>>, vector<8x1xf32>
      tpu.vector_store %arg6[%c0_25, %c0_26], %39 {strides = array<i32>} : memref<8x1xf32, #tpu.memory_space<vmem>>, vector<8x1xf32>,
      %cst_27 = arith.constant 0.000000e+00 : f32
      %41 = vector.broadcast %cst_27 : f32 to vector<8x1xf32>
      %c0_28 = arith.constant 0 : index
      %c0_29 = arith.constant 0 : index
      %42 = vector.load %arg7[%c0_28, %c0_29] : memref<8x1xf32, #tpu.memory_space<vmem>>, vector<8x1xf32>
      tpu.vector_store %arg7[%c0_28, %c0_29], %41 {strides = array<i32>} : memref<8x1xf32, #tpu.memory_space<vmem>>, vector<8x1xf32>,
    } else {
    }
    %c0 = arith.constant 0 : index
    %c0_1 = arith.constant 0 : index
    %3 = vector.load %arg2[%c0, %c0_1] : memref<8x32xf32, #tpu.memory_space<vmem>>, vector<8x32xf32>
    %c0_2 = arith.constant 0 : index
    %c0_3 = arith.constant 0 : index
    %4 = vector.load %arg3[%c0_2, %c0_3] : memref<8x1xi32, #tpu.memory_space<vmem>>, vector<8x1xi32>
    %5 = tpu.iota {dimensions = array<i32: 1>} : vector<8x32xi32>
    %c32_i32 = arith.constant 32 : i32
    %6 = arith.muli %arg1, %c32_i32 : i32
    %7 = vector.broadcast %6 : i32 to vector<8x32xi32>
    %8 = arith.addi %5, %7 : vector<8x32xi32>
    %c0_4 = arith.constant 0 : index
    %c0_5 = arith.constant 0 : index
    %9 = vector.load %arg7[%c0_4, %c0_5] : memref<8x1xf32, #tpu.memory_space<vmem>>, vector<8x1xf32>
    %10 = vector.broadcast %4 : vector<8x1xi32> to vector<8x32xi32>
    %11 = arith.cmpi eq, %8, %10 : vector<8x32xi32>
    %cst = arith.constant 0.000000e+00 : f32
    %12 = vector.broadcast %cst : f32 to vector<8x32xf32>
    %13 = arith.select %11, %3, %12 : vector<8x32xi1>, vector<8x32xf32>
    %cst_6 = arith.constant dense<0.000000e+00> : vector<8xf32>
    %14 = vector.multi_reduction <add>, %13, %cst_6 [1] : vector<8x32xf32> to vector<8xf32>
    %15 = vector.shape_cast %14 : vector<8xf32> to vector<8x1xf32>
    %16 = arith.addf %9, %15 : vector<8x1xf32>
    %c0_7 = arith.constant 0 : index
    %c0_8 = arith.constant 0 : index
    %17 = vector.load %arg7[%c0_7, %c0_8] : memref<8x1xf32, #tpu.memory_space<vmem>>, vector<8x1xf32>
    tpu.vector_store %arg7[%c0_7, %c0_8], %16 {strides = array<i32>} : memref<8x1xf32, #tpu.memory_space<vmem>>, vector<8x1xf32>,
    %c0_9 = arith.constant 0 : index
    %c0_10 = arith.constant 0 : index
    %18 = vector.load %arg5[%c0_9, %c0_10] : memref<8x1xf32, #tpu.memory_space<vmem>>, vector<8x1xf32>
    %cst_11 = arith.constant dense<0xFF800000> : vector<8xf32>
    %19 = vector.multi_reduction <maximumf>, %3, %cst_11 [1] : vector<8x32xf32> to vector<8xf32>
    %20 = vector.shape_cast %19 : vector<8xf32> to vector<8x1xf32>
    %21 = arith.maximumf %18, %20 : vector<8x1xf32>
    %22 = vector.broadcast %21 : vector<8x1xf32> to vector<8x32xf32>
    %23 = arith.subf %3, %22 : vector<8x32xf32>
    %24 = arith.subf %18, %21 : vector<8x1xf32>
    %25 = math.exp %24 : vector<8x1xf32>
    %c0_12 = arith.constant 0 : index
    %c0_13 = arith.constant 0 : index
    %26 = vector.load %arg6[%c0_12, %c0_13] : memref<8x1xf32, #tpu.memory_space<vmem>>, vector<8x1xf32>
    %27 = arith.mulf %25, %26 : vector<8x1xf32>
    %28 = math.exp %23 : vector<8x32xf32>
    %cst_14 = arith.constant dense<0.000000e+00> : vector<8xf32>
    %29 = vector.multi_reduction <add>, %28, %cst_14 [1] : vector<8x32xf32> to vector<8xf32>
    %30 = vector.shape_cast %29 : vector<8xf32> to vector<8x1xf32>
    %31 = arith.addf %27, %30 : vector<8x1xf32>
    %c0_15 = arith.constant 0 : index
    %c0_16 = arith.constant 0 : index
    %32 = vector.load %arg6[%c0_15, %c0_16] : memref<8x1xf32, #tpu.memory_space<vmem>>, vector<8x1xf32>
    tpu.vector_store %arg6[%c0_15, %c0_16], %31 {strides = array<i32>} : memref<8x1xf32, #tpu.memory_space<vmem>>, vector<8x1xf32>,
    %c0_17 = arith.constant 0 : index
    %c0_18 = arith.constant 0 : index
    %33 = vector.load %arg5[%c0_17, %c0_18] : memref<8x1xf32, #tpu.memory_space<vmem>>, vector<8x1xf32>
    tpu.vector_store %arg5[%c0_17, %c0_18], %21 {strides = array<i32>} : memref<8x1xf32, #tpu.memory_space<vmem>>, vector<8x1xf32>,
    %c0_i32_19 = arith.constant 0 : i32
    %34 = arith.cmpi eq, %arg1, %c0_i32_19 : i32
    %35 = arith.extui %34 : i1 to i32
    %c0_i32_20 = arith.constant 0 : i32
    %36 = arith.cmpi ne, %35, %c0_i32_20 : i32
    scf.if %36 {
      %37 = tpu.iota {dimensions = array<i32: 0>} : vector<8x1xi32>
      %c8_i32 = arith.constant 8 : i32
      %38 = arith.muli %arg0, %c8_i32 : i32
      %39 = vector.broadcast %38 : i32 to vector<8x1xi32>
      %40 = arith.addi %37, %39 : vector<8x1xi32>
      %c16_i32 = arith.constant 16 : i32
      %41 = vector.broadcast %c16_i32 : i32 to vector<8x1xi32>
      %42 = arith.cmpi slt, %40, %41 : vector<8x1xi32>
      %c0_i32_21 = arith.constant 0 : i32
      %43 = vector.broadcast %c0_i32_21 : i32 to vector<8x1xi32>
      %44 = arith.cmpi ne, %4, %43 : vector<8x1xi32>
      %45 = arith.andi %42, %44 : vector<8x1xi1>
      %c0_22 = arith.constant 0 : index
      %c0_23 = arith.constant 0 : index
      %46 = vector.load %arg5[%c0_22, %c0_23] : memref<8x1xf32, #tpu.memory_space<vmem>>, vector<8x1xf32>
      %c0_24 = arith.constant 0 : index
      %c0_25 = arith.constant 0 : index
      %47 = vector.load %arg6[%c0_24, %c0_25] : memref<8x1xf32, #tpu.memory_space<vmem>>, vector<8x1xf32>
      %48 = math.log %47 : vector<8x1xf32>
      %49 = arith.addf %46, %48 : vector<8x1xf32>
      %c0_26 = arith.constant 0 : index
      %c0_27 = arith.constant 0 : index
      %50 = vector.load %arg7[%c0_26, %c0_27] : memref<8x1xf32, #tpu.memory_space<vmem>>, vector<8x1xf32>
      %51 = arith.subf %49, %50 : vector<8x1xf32>
      %cst_28 = arith.constant 0.000000e+00 : f32
      %52 = vector.broadcast %cst_28 : f32 to vector<8x1xf32>
      %53 = arith.select %45, %51, %52 : vector<8x1xi1>, vector<8x1xf32>
      %cst_29 = arith.constant 1.000000e+00 : f32
      %cst_30 = arith.constant 0.000000e+00 : f32
      %54 = vector.broadcast %cst_29 : f32 to vector<8x1xf32>
      %55 = vector.broadcast %cst_30 : f32 to vector<8x1xf32>
      %56 = arith.select %45, %54, %55 : vector<8x1xi1>, vector<8x1xf32>
      %57 = tpu.iota {dimensions = array<i32: 1>} : vector<1x8x128xi32>
      %c0_i32_31 = arith.constant 0 : i32
      %58 = vector.broadcast %c0_i32_31 : i32 to vector<1x8x128xi32>
      %59 = arith.cmpi eq, %57, %58 : vector<1x8x128xi32>
      %60 = vector.shape_cast %53 : vector<8x1xf32> to vector<1x8x1xf32>
      %cst_32 = arith.constant dense<0.000000e+00> : vector<1xf32>
      %61 = vector.multi_reduction <add>, %60, %cst_32 [1, 2] : vector<1x8x1xf32> to vector<1xf32>
      %62 = vector.shape_cast %61 : vector<1xf32> to vector<1x1x1xf32>
      %63 = vector.extract %62[0, 0, 0] : f32 from vector<1x1x1xf32>
      %c1_i32 = arith.constant 1 : i32
      %64 = vector.broadcast %c1_i32 : i32 to vector<1x8x128xi32>
      %65 = arith.cmpi eq, %57, %64 : vector<1x8x128xi32>
      %66 = vector.shape_cast %56 : vector<8x1xf32> to vector<1x8x1xf32>
      %cst_33 = arith.constant dense<0.000000e+00> : vector<1xf32>
      %67 = vector.multi_reduction <add>, %66, %cst_33 [1, 2] : vector<1x8x1xf32> to vector<1xf32>
      %68 = vector.shape_cast %67 : vector<1xf32> to vector<1x1x1xf32>
      %69 = vector.extract %68[0, 0, 0] : f32 from vector<1x1x1xf32>
      %cst_34 = arith.constant 0.000000e+00 : f32
      %70 = vector.broadcast %69 : f32 to vector<1x8x128xf32>
      %71 = vector.broadcast %cst_34 : f32 to vector<1x8x128xf32>
      %72 = arith.select %65, %70, %71 : vector<1x8x128xi1>, vector<1x8x128xf32>
      %73 = vector.broadcast %63 : f32 to vector<1x8x128xf32>
      %74 = arith.select %59, %73, %72 : vector<1x8x128xi1>, vector<1x8x128xf32>
      %c0_35 = arith.constant 0 : index
      %c0_36 = arith.constant 0 : index
      %c0_37 = arith.constant 0 : index
      %75 = vector.load %arg4[%c0_35, %c0_36, %c0_37] : memref<1x8x128xf32, #tpu.memory_space<vmem>>, vector<1x8x128xf32>
      tpu.vector_store %arg4[%c0_35, %c0_36, %c0_37], %74 {strides = array<i32>} : memref<1x8x128xf32, #tpu.memory_space<vmem>>, vector<1x8x128xf32>,
    } else {
    }
    return
  }
  func.func @transform_0(%arg0: i32, %arg1: i32) -> (i32, i32) {
    %c0_i32 = arith.constant 0 : i32
    return %arg0, %arg1 : i32, i32
  }
  func.func @transform_1(%arg0: i32, %arg1: i32) -> (i32, i32) {
    %c0_i32 = arith.constant 0 : i32
    %c0_i32_0 = arith.constant 0 : i32
    return %arg0, %c0_i32 : i32, i32
  }
  func.func @transform_2(%arg0: i32, %arg1: i32) -> (i32, i32, i32) {
    %c0_i32 = arith.constant 0 : i32
    %c0_i32_0 = arith.constant 0 : i32
    %c0_i32_1 = arith.constant 0 : i32
    return %arg0, %c0_i32, %c0_i32_0 : i32, i32, i32
  }
}

</mosaic_0001>

<bundles_post_ra>
// kernel: tpu_custom_call.1
= control target key start
LH: loop header
LB: loop body
LE: loop exit
PB: predicated region body
PF: predicated region fallthrough
CT: control target
= control target key end

     0   :  { %7 = vsyncpa [#allocation6], 0  ;;  %s687_s0 = inlined_call_operand.vmem [shape: f32[16,32], index: 0, kind: input, shape index: {}]   ;;  %s688_s1 = inlined_call_operand.vmem [shape: s32[16,1], index: 1, kind: input, shape index: {}]   ;;  %s689_s2 = inlined_call_operand.hbm [shape: f32[2,8,128], index: 2, kind: output, shape index: {}]  }
   0x1   :  { %9 = vsyncpa [#allocation6 + $0x1], 0  ;;  %s554_s9 = smov 0   ;;  %s556_s10 = smov 0  }
   0x2   :  { %s558_s11 = smov 0   ;;  %s560_s12 = smov 0  }
   0x3   :  { %s562_s13 = smov 0   ;;  %s564_s14 = smov 0  }
   0x4 LB: > { %s374_s15 = sadd.s32 4294967295, %s533_s14   ;;  %s375_s16 = sadd.s32 4294967294, %s533_s14   ;;  %s533_s14 = sphi %s564_s14, %s15_s14   ;;  %s529_s13 = sphi %s562_s13, %s698_s13   ;;  %s525_s12 = sphi %s560_s12, %s697_s12   ;;  %s521_s11 = sphi %s558_s11, %s696_s11   ;;  %s517_s10 = sphi %s556_s10, %s695_s10   ;;  %s513_s9 = sphi %s554_s9, %s694_s9  }
   0x5   : > { %s27_s17 = sadd.s32 1, %s529_s13  ;;  %s88_s18 = sadd.s32 1, %s521_s11 }
   0x6   : > { %p29_p0 = scmp.ge.s32.totalorder %s27_s17, 2  ;;  %p98_p1 = scmp.ne.s32.totalorder %s521_s11, %s517_s10 }
   0x7   : > { %p99_p2 = scmp.eq.s32.totalorder %s374_s15, 1  ;;  %p104_p3 = scmp.ne.s32.totalorder %s517_s10, %s513_s9 }
   0x8   : > { %s700_s17 = smov (%p29_p0, %s27_s17), 0  ;;  %p105_p5 = scmp.eq.s32.totalorder %s375_s16, 1 }
   0x9   : > { %p594_p4 = por %p99_p2, %p98_p1  ;;  %s85_s20 = ssub.s32 %s529_s13, %s700_s17 }
   0xa   : > { %p378_p6 = scmp.ge.s32.totalorder %s533_s14, 1  ;;  %p86_p7 = scmp.eq.s32.totalorder %s85_s20, 0 }
   0xb   : > { %p601_p8 = por %p105_p5, %p104_p3  ;;  %p140_p9 = scmp.lt.s32.totalorder %s533_s14, 3 }
   0xc   : > { %s607_s22 = scalar_select %p86_p7, %s521_s11, %s88_s18  }
   0xd   : > { %p141_p10 = pnand %p378_p6, %p140_p9 }
   0xe   : > { %p168_p11 = scmp.lt.s32.totalorder (!%p141_p10), %s525_s12, 1  ;;  %s382_s3 = sshll.u32 (!%p141_p10), %s525_s12, 3 }
   0xf   : > { %144 = sbr.rel (%p141_p10) target bundleno = 696 (0x2b8), region = 28  ;;  %s165_s4 = sand.u32 (!%p141_p10), 1, %s517_s10  }
  0x10   : > { %s379_s5 = sshll.u32 (!%p141_p10), %s165_s4, 3  ;;  %s384_s6 = sshll.u32 (!%p141_p10), %s525_s12, 7 }
  0x11   : > { %s167_s8 = scalar_lea.vmem (!%p141_p10), [#allocation5], %s379_s5  ;;  %s538_s25 = smov (!%p141_p10), [#allocation5]  }
  0x12   : > { %s292_s15 = sshll.u32 (!%p141_p10), %s167_s8, 4  ;;  %s461_s26 = sshll.u32 (!%p141_p10), %s538_s25, 4  ;;  %s293_s15 = int_to_ptr.vmem [resolvable:$true] %s292_s15  ;;  %s462_s26 = int_to_ptr.vmem [resolvable:$false] %s461_s26 }
  0x13   : > { %p464_p1 = scmp.lt.s32.totalorder (!%p141_p10), %s293_s15, %s462_s26 }
  0x14   : > { %vm183_vm0 = vcmask 7168   ;;  %v535_v0 = vmov -inf   ;;  %s169_s23 = scalar_select %p168_p11, %s525_s12, 1  ;;  %vm200_vm1 = vcmask 261120   ;;  %v536_v3 = vmov 0  }
  0x15   : > { %184 = vst.msk [vmem:[#allocation2] sm:$0xff] %vm183_vm0, %v535_v0  ;;  %449 = vset.pattern.permute.xlu0 %v536_v3  ;;  %450 = vset.pattern.permute.xlu1 %v536_v3  ;;  %v537_v5 = vmov 0.0   ;;  %v189_v13 = vlaneseq  ;;  %v237_v21 = vstv %s382_s3  ;;  %s279_s12 = scalar_lea.sflag [#allocation6], %s165_s4 }
  0x16   : > { %s380_s24 = sshll.u32 %s169_s23, 3  ;;  %185 = vst.msk [vmem:[#allocation3] sm:$0xff] %vm183_vm0, %v537_v5  ;;  %186 = vst.msk [vmem:[#allocation4] sm:$0xff] %vm183_vm0, %v537_v5  ;;  %s647_s23 = scalar_lea.hbm %s689_s2, %s384_s6 }
  0x17   : > { %s174_s27 = scalar_lea.vmem %s687_s0, %s380_s24  ;;  %s178_s30 = scalar_lea.vmem %s688_s1, %s380_s24  ;;  %v190_v14 = vand.u32 127, %v189_v13  ;;  %v624_v20 = vshrl.u32 %v189_v13, 7 }
  0x18   : > { %v187_v1 = vld [vmem:[%s174_s27] sm:$0xff]  ;;  %s457_s24 = scalar_lea.vmem %s293_s15, 128  ;;  %s463_s27 = scalar_lea.vmem %s462_s26, 256 }
  0x19   : > { %v208_v2 = vsel %vm200_vm1, %v187_v1, -inf  ;;  %v188_v4 = vld [vmem:[%s178_s30] sm:$0xff]  ;;  %v238_v22 = vadd.s32 %v237_v21, %v624_v20  ;;  %vm262_vm6 = vcmp.eq.s32.totalorder %v624_v20, 1  ;;  %vm251_vm7 = vcmp.eq.s32.totalorder %v624_v20, 0  ;;  %p458_p12 = scmp.ne.s32.totalorder %s293_s15, %s457_s24  ;;  %p465_p2 = scmp.lt.s32.totalorder %s463_s27, %s457_s24 }
  0x1a   : > { %209 = vmax.xlane.f32.xlu0 %v208_v2  ;;  %196 = vperm.xlu1 %450, %v188_v4   ;;  %vm240_vm3 = vcmp.ne.s32.totalorder %v188_v4, 0 }
  0x1b   : > { %vm239_vm4 = vcmp.lt.s32.totalorder %v238_v22, 16  ;;  %p459_p13 = pnand %p458_p12, %p594_p4  ;;  %p466_p3 = por %p465_p2, %p464_p1 }
  0x1c   : > { %v207_v6 = vld [vmem:[#allocation2] sm:$0xff]  ;;  %vm628_vm5 = vmand %vm239_vm4, %vm240_vm3 }
  0x1d   : > { %v250_v24 = vsel %vm628_vm5, 1.0, %v537_v5  ;;  %v221_v28 = vld [vmem:[#allocation3] sm:$0xff]  ;;  %v194_v32 = vld [vmem:[#allocation4] sm:$0xff]  ;;  %p460_p0 = pneg %p459_p13 }
  0x1e   : > { %v263_v25 = vsel %vm183_vm0, %v250_v24, 0.0 }
  0x1f   : > { %p467_p5 = pnand %p466_p3, %p460_p0 }
  0x95   : > { %v197_v15 = vpop.permute.xlu1 %196 }
  0x96   : > { %vm198_vm2 = vcmp.eq.s32.totalorder %v190_v14, %v197_v15 }
  0x97   : > { %v199_v17 = vsel %vm198_vm2, %v187_v1, 0.0 }
  0x98   : > { %v201_v19 = vsel %vm200_vm1, %v199_v17, 0.0 }
  0xa3   : > { %v210_v7 = vpop.xlane.xlu0 %209 }
  0xa4   : > { %v211_v8 = vmax.f32 %v207_v6, %v210_v7 }
  0xa6   : > { %v218_v9 = vsub.f32 %v207_v6, %v211_v8  ;;  %230 = vst.msk [vmem:[#allocation2] sm:$0xff] %vm183_vm0, %v211_v8  ;;  %214 = vperm.xlu0 %449, %v211_v8  }
  0xa8   : > { %v219_v26 = vmul.f32 1.442695, %v218_v9 }
  0xad   : > { %v242_v38 = vld [vmem:[#allocation2] sm:$0xff] }
  0xc5   : > { %264 = vadd.xlane.f32.xlu0 %v263_v25 }
 0x121   : > { %v215_v10 = vpop.permute.xlu0 %214 }
 0x122   : > { %v217_v11 = vsub.f32 %v187_v1, %v215_v10 }
 0x124   : > { %v223_v12 = vmul.f32 1.442695, %v217_v11 }
 0x126   : > { %451 = vpow2.f32 %v223_v12 }
 0x127   : > { %453 = vpow2.f32 %v219_v26 }
 0x133   : > { %v452_v16 = vpop.eup %451 }
 0x134   : > { %v225_v18 = vsel %vm200_vm1, %v452_v16, 0.0  ;;  %v454_v27 = vpop.eup %453 }
 0x135   : > { %226 = vadd.xlane.f32.xlu1 %v225_v18  ;;  %v222_v29 = vmul.f32 %v454_v27, %v221_v28 }
 0x139   : > { %202 = vadd.xlane.f32.xlu1 %v201_v19 }
 0x14e   : > { %v265_v44 = vpop.xlane.xlu0 %264 }
 0x14f   : > { %v266_v45 = vrot.slane %v265_v44, 4 }
 0x151   : > { %v267_v46 = vadd.f32 %v266_v45, %v265_v44 }
 0x153   : > { %v268_v47 = vrot.slane %v267_v46, 2 }
 0x155   : > { %v269_v51 = vadd.f32 %v268_v47, %v267_v46 }
 0x157   : > { %v270_v54 = vrot.slane %v269_v51, 1 }
 0x159   : > { %v271_v57 = vadd.f32 %v270_v54, %v269_v51 }
 0x1be   : > { %v227_v30 = vpop.xlane.xlu1 %226 }
 0x1bf   : > { %v228_v31 = vadd.f32 %v227_v30, %v222_v29 }
 0x1c1   : > { %229 = vst.msk [vmem:[#allocation3] sm:$0xff] %vm183_vm0, %v228_v31 }
 0x1c2   : > { %v203_v33 = vpop.xlane.xlu1 %202 }
 0x1c3   : > { %v204_v34 = vadd.f32 %v203_v33, %v194_v32 }
 0x1c5   : > { %206 = vst.msk [vmem:[#allocation4] sm:$0xff] %vm183_vm0, %v204_v34 }
 0x1c8   : > { %v243_v35 = vld [vmem:[#allocation3] sm:$0xff] }
 0x1c9   : > { %455 = vlog2.f32 %v243_v35 }
 0x1cc   : > { %v247_v39 = vld [vmem:[#allocation4] sm:$0xff] }
 0x1d6   : > { %v456_v36 = vpop.eup %455 }
 0x1d7   : > { %v245_v37 = vmul.f32 0.6931472, %v456_v36 }
 0x1d9   : > { %v246_v40 = vadd.f32 %v245_v37, %v242_v38 }
 0x1db   : > { %v248_v41 = vsub.f32 %v246_v40, %v247_v39 }
 0x1dd   : > { %v249_v42 = vsel %vm628_vm5, %v248_v41, 0.0 }
 0x1de   : > { %v252_v43 = vsel %vm183_vm0, %v249_v42, 0.0 }
 0x1df   : > { %253 = vadd.xlane.f32.xlu1 %v252_v43 }
 0x268   : > { %v254_v48 = vpop.xlane.xlu1 %253 }
 0x269   : > { %v255_v49 = vrot.slane %v254_v48, 4 }
 0x26b   : > { %v256_v50 = vadd.f32 %v255_v49, %v254_v48 }
 0x26d   : > { %v257_v52 = vrot.slane %v256_v50, 2 }
 0x26f   : > { %v258_v53 = vadd.f32 %v257_v52, %v256_v50 }
 0x271   : > { %v259_v55 = vrot.slane %v258_v53, 1 }
 0x273   : > { %v260_v56 = vadd.f32 %v259_v55, %v258_v53 }
 0x275   : > { %387 = vpush %v260_v56 }
 0x276   : > { %389 = vpush %v271_v57 }
 0x2a6   : > { %s388_s7 = spop %387 }
 0x2a7   : > { %v275_v58 = vstv %s388_s7  ;;  %s390_s16 = spop %389 }
 0x2a8   : > { %v273_v59 = vstv %s390_s16 }
 0x2a9   : > { %v274_v60 = vsel %vm262_vm6, %v273_v59, 0.0 }
 0x2aa   : > { %v276_v61 = vsel %vm251_vm7, %v275_v58, %v274_v60 }
 0x2ab   : > { %277 = vst [vmem:[%s167_s8] sm:$0xff] %v276_v61 }
 0x2ac   : > { %470 = shalt.err (!%p467_p5)
}
 0x2ad   : > { %s471_s28 = scalar_lea.hbm %s647_s23, 128  ;;  %s475_s3 = scalar_lea.hbm %s689_s2, 256 }
 0x2ae   : > { %p472_p6 = scmp.ne.s32.totalorder %s647_s23, %s471_s28  ;;  %p476_p10 = scmp.lt.s32.totalorder %s647_s23, %s689_s2 }
 0x2af   : > { %p477_p11 = scmp.lt.s32.totalorder %s475_s3, %s471_s28 }
 0x2b0   : > { %p473_p7 = pnand %p472_p6, %p594_p4 }
 0x2b1   : > { %p478_p12 = por %p477_p11, %p476_p10 }
 0x2b2   : > { %p474_p9 = pneg %p473_p7 }
 0x2b4   : > { %p479_p13 = pnand %p478_p12, %p474_p9 }
 0x2b6   : > { %482 = shalt.err (!%p479_p13)
}
 0x2b7   : > { %391 = dma.vmem_to_hbm [thread:$0]  (%p594_p4), %s293_s15, 128, %s647_s23, %s279_s12  }
 0x2b8 PF: > { %p397_p0 = scmp.ge.s32.totalorder %s533_s14, 2  ;;  %s304_s6 = sand.u32 1, %s513_s9  }
 0x2b9   : > { %s305_s7 = scalar_lea.sflag [#allocation6], %s304_s6 }
 0x2ba   : > { %p394_p1 = pnand %p397_p0, %p601_p8 }
 0x2bc   : > { %p395_p2 = pneg %p394_p1 }
 0x2be   : > { %508 = dma.done.wait (%p395_p2), %s305_s7, 128  }
 0x2bf   : > { %510 = vsyncadd (%p395_p2), %s305_s7, 4294967168  ;;  %s15_s14 = sadd.s32 1, %s533_s14   ;;  %s694_s9 = smov %s517_s10 }
 0x2c0   : > { %p12_p3 = scmp.ge.s32.totalorder %s15_s14, 4   ;;  %s695_s10 = smov %s521_s11 }
 0x2c1   : > { %s696_s11 = smov %s607_s22  ;;  %s697_s12 = smov %s529_s13 }
 0x2c2   : > { %s698_s13 = smov %s700_s17  ;;  %14 = sbr.rel (!%p12_p3) target bundleno = 4 (0x4), region = 74 }
 0x2c7   :  { %310 = vsyncpa [#allocation6], 1 }
 0x2c8   :  { %312 = vsyncpa [#allocation6 + $0x1], 1 }

</bundles_post_ra>
